<compile_context>
chip_gen: v7x
topology: tpu7x:2x2x1
jax: 0.10.0
libtpu: 0.0.40
codegen_flags: <defaults>
</compile_context>

<pallas_src>
import functools

import jax
import jax.numpy as jnp
from jax import lax
from jax.experimental import pallas as pl
from jax.experimental.pallas import tpu as pltpu


# ----------------------------------------------------------------------------
# Kernel
# ----------------------------------------------------------------------------
def sts_loss_kernel(scores_ref, w_ref, b_ref, tgt_ref,   # inputs
                    pred_ref, stats_ref,                  # outputs
                    *, loss_type, batch):
    c = pl.program_id(0)                       # core (megacore split) index
    i = pl.program_id(1)                       # batch-tile index within core
    t = c * pl.num_programs(1) + i             # global batch-tile index
    tb = tgt_ref.shape[1]                      # batch tile size (static)

    # ---- init the resident stats accumulator block on this core's 1st tile --
    @pl.when(i == 0)
    def _init():
        stats_ref[...] = jnp.zeros_like(stats_ref)

    # ---- regression head: Linear(H -> 1) on the MXU -------------------------
    # (8, H) weight slab (all rows identical, scores dtype) contracted against
    # (tb, H) scores on their H axes -> (8, tb) f32; row 0 is the prediction
    # row.  bf16 scores stay bf16 all the way into the MXU.
    pred_all = lax.dot_general(
        w_ref[...], scores_ref[...],
        dimension_numbers=(((1,), (1,)), ((), ())),
        preferred_element_type=jnp.float32)              # (8, tb) f32
    pred = pred_all[0:1, :] + b_ref[0]                   # (1, tb) f32
    tgt = tgt_ref[...]                                   # (1, tb) f32

    # ---- mask lanes past the end of the batch (ragged last tile) ------------
    col = t * tb + lax.broadcasted_iota(jnp.int32, (1, tb), 1)
    valid = col < batch
    pred = jnp.where(valid, pred, 0.0)
    tgt = jnp.where(valid, tgt, 0.0)

    pred_ref[...] = pred                                 # dense lane store

    # ---- per-element STS loss ------------------------------------------------
    diff = pred - tgt                                    # masked lanes are 0
    if loss_type == 'mae':
        per_elem = jnp.abs(diff)
    elif loss_type == 'huber':
        ad = jnp.abs(diff)
        per_elem = jnp.where(ad < 1.0, 0.5 * diff * diff, ad - 0.5)
    else:  # 'mse' (default / fallback)
        per_elem = diff * diff

    # ---- fused sufficient statistics: ONE reduce, ONE accumulate per tile ----
    # rows: [sum_loss, sum_p, sum_t, sum_pp, sum_tt, sum_pt]
    pt = jnp.concatenate([pred, tgt], axis=0)                          # (2, tb)
    slab = jnp.concatenate([per_elem, pt, pt * pt, pred * tgt], axis=0)  # (6, tb)
    partial = jnp.sum(slab, axis=1, keepdims=True)                     # (6, 1)
    partial8 = jnp.concatenate(
        [partial, jnp.zeros((2, 1), jnp.float32)], axis=0)             # (8, 1)
    # broadcast over the 128 lanes of the resident block -> full, unmasked RMW
    stats_ref[...] = stats_ref[...] + partial8


# ----------------------------------------------------------------------------
# Wrapper
# ----------------------------------------------------------------------------
def _vmem_limit_bytes():
    """Generation-aware scoped-VMEM limit (v5e/v6e: 64 MiB, v7x: 32 MiB)."""
    try:
        cap = int(pltpu.get_tpu_info().vmem_capacity_bytes)
    except Exception:
        cap = 64 * 1024 * 1024
    return min(64 * 1024 * 1024, max(16 * 1024 * 1024, cap // 2))


def _pick_block_b(batch, hidden, itemsize, vmem_limit):
    """Batch tile sized from an explicit VMEM budget.

    2x scores block (double-buffered) + 2x target + 2x pred blocks
    (lane-dense, 8-sublane padded f32) + weight slab  <=  0.75 * vmem_limit.
    """
    budget = int(0.75 * vmem_limit)
    fixed = 8 * hidden * itemsize + (1 << 20)        # weight slab + headroom
    per_row = 2 * hidden * itemsize + 2 * 2 * 8 * 4  # scores + tgt/pred bufs
    tb = max(0, budget - fixed) // max(1, per_row)
    if tb >= batch:
        return batch                                 # whole batch in one block
    tb = max(128, (tb // 128) * 128)                 # lane-aligned tiles
    return min(tb, batch)


def sts_loss_forward(scores, weight, bias, target, *, loss_type='mse',
                     block_b=None):
    """Fused regression-head + STS loss + correlation kernel.

    scores : (B, H) native dtype (bf16 or f32) -- student model output
    weight : regression-head weight, any of (1, H) / (H, 1) / (H,)
    bias   : regression-head bias, shape () / (1,) / (1, 1)
    target : (B, 1) gold similarity labels

    Returns (predictions (B, 1) f32, loss, pearson, spearman, pred_mean,
             target_mean) with the metrics as 0-d f32 arrays.
    """
    B, H = scores.shape
    in_dtype = scores.dtype
    # Head weights live in the activation dtype (matches the PyTorch bf16 path);
    # accumulation stays f32 on the MXU.
    w_row = jnp.asarray(weight).reshape(1, H).astype(in_dtype)
    w_slab = jnp.broadcast_to(w_row, (8, H))                  # sublane-aligned M
    b_vec = jnp.asarray(bias, jnp.float32).reshape((1,))
    tgt_row = jnp.asarray(target, jnp.float32).reshape(1, B)  # lane-dense

    vmem_limit = _vmem_limit_bytes()
    itemsize = jnp.dtype(in_dtype).itemsize
    if block_b is None:
        tb = _pick_block_b(B, H, itemsize, vmem_limit)
    else:
        tb = min(int(block_b), B)
        if tb < B:                                            # keep lane-aligned
            tb = min(max(128, (tb // 128) * 128), B)

    nb = pl.cdiv(B, tb)
    # Split the batch tiles across v7x's two TensorCores when it divides evenly
    # (harmless serial loop on 1-TC chips).  Odd tile counts fall back to one
    # core so no block index ever starts past the end of the array.
    ncores = 2 if (nb >= 2 and nb % 2 == 0) else 1
    nbi = nb // ncores

    kernel = functools.partial(sts_loss_kernel, loss_type=loss_type, batch=B)

    in_specs = [
        pl.BlockSpec((tb, H), lambda c, i: (c * nbi + i, 0)),      # scores tile
        pl.BlockSpec((8, H), lambda c, i: (0, 0)),                 # weight slab
        pl.BlockSpec(memory_space=pltpu.MemorySpace.SMEM),         # bias scalar
        pl.BlockSpec((1, tb), lambda c, i: (0, c * nbi + i)),      # target row
    ]
    out_specs = [
        pl.BlockSpec((1, tb), lambda c, i: (0, c * nbi + i)),      # predictions
        pl.BlockSpec((8, 128), lambda c, i: (0, c)),               # per-core sums
    ]
    out_shape = [
        jax.ShapeDtypeStruct((1, B), jnp.float32),
        jax.ShapeDtypeStruct((8, 128 * ncores), jnp.float32),
    ]

    pred_row, stats = pl.pallas_call(
        kernel,
        grid=(ncores, nbi),
        in_specs=in_specs,
        out_specs=out_specs,
        out_shape=out_shape,
        compiler_params=pltpu.CompilerParams(
            dimension_semantics=("parallel", "arbitrary"),
            vmem_limit_bytes=vmem_limit),
    )(scores, w_slab, b_vec, tgt_row)

    # ---- combine per-core partial sums and finalize in plain JAX ------------
    s = stats.reshape(8, ncores, 128)[:, :, 0].sum(axis=1)        # (8,)
    n = jnp.float32(B)
    loss = s[0] / n
    pmean = s[1] / n
    tmean = s[2] / n
    # One-pass (E[xy] - E[x]E[y]) form in f32; varp/vart clamped at 0.
    cov = s[5] - s[1] * tmean
    varp = jnp.maximum(s[3] - s[1] * pmean, 0.0)
    vart = jnp.maximum(s[4] - s[2] * tmean, 0.0)
    den = jnp.sqrt(varp * vart)
    pearson = jnp.where(den > 0.0, cov / den, jnp.float32(0.0))
    spearman = pearson      # faithful to the module: spearman := pearson

    pred = pred_row.reshape(B, 1)
    return pred, loss, pearson, spearman, pmean, tmean


def record_logging_output(logging_output, batch_denom, content):
    # Non-distributed path of STSLoss.record_logging_output (pure Python glue).
    for k, v in content.items():
        if k in ('pearson', 'spearman', 'predictions', 'target'):
            record_v = float(v)
        else:  # e.g. 'loss'
            record_v = float(v) / float(batch_denom)
        logging_output.setdefault(k, []).append(record_v)
    return logging_output


# ----------------------------------------------------------------------------
# Demo / correctness check
# ----------------------------------------------------------------------------
if __name__ == "__main__":
    keys = jax.random.split(jax.random.PRNGKey(0), 5)
    k_scores, k_w, k_tgt, k_scores2, k_tgt2 = keys

    B, H = 200, 64
    scores = jax.random.normal(k_scores, (B, H), dtype=jnp.float32)
    scores = scores.astype(jnp.bfloat16)                  # native bf16 stream
    # regression_head init: weight ~ N(0, 0.02), bias = 0 (nn.Linear(H, 1))
    weight = 0.02 * jax.random.normal(k_w, (1, H), dtype=jnp.float32)
    bias = jnp.zeros((1,), dtype=jnp.float32)
    target = jax.random.uniform(k_tgt, (B, 1), dtype=jnp.float32) * 5.0

    def reference(scores, weight, bias, target, loss_type):
        # Matches kernel numerics: head weights in the activation dtype
        # (PyTorch bf16 head), accumulation in f32.
        w = weight.astype(scores.dtype).astype(jnp.float32).reshape(1, -1)
        s = scores.astype(jnp.float32)
        pred = jnp.sum(s * w, axis=-1, keepdims=True) + bias.reshape(1, 1)
        d = pred - target
        if loss_type == 'mae':
            loss = jnp.mean(jnp.abs(d))
        elif loss_type == 'huber':
            loss = jnp.mean(jnp.where(jnp.abs(d) < 1.0, 0.5 * d * d,
                                      jnp.abs(d) - 0.5))
        else:
            loss = jnp.mean(d * d)
        pm, tm = pred.mean(), target.mean()
        num = jnp.sum((pred - pm) * (target - tm))
        den = jnp.sqrt(jnp.sum((pred - pm) ** 2) * jnp.sum((target - tm) ** 2))
        pearson = jnp.where(den != 0, num / den, 0.0)
        return pred, loss, pearson, pm, tm

    logging_output = {}
    # (loss_type, block_b): block_b=128 -> nb=2 -> 2-core split with a ragged
    # last tile; block_b=None -> single whole-batch block.
    configs = [('mse', 128), ('mae', 128), ('huber', 128), ('mse', None)]
    for lt, tb in configs:
        out = jax.block_until_ready(
            sts_loss_forward(scores, weight, bias, target,
                             loss_type=lt, block_b=tb))
        pred, loss, pearson, spearman, pmean, tmean = out
        rpred, rloss, rpearson, rpm, rtm = reference(scores, weight, bias,
                                                     target, lt)
        assert jnp.allclose(pred, rpred, atol=2e-4, rtol=2e-4), (lt, tb)
        assert jnp.allclose(loss, rloss, atol=2e-4, rtol=2e-4), (lt, tb)
        assert jnp.allclose(pearson, rpearson, atol=2e-4, rtol=2e-4), (lt, tb)
        assert jnp.allclose(spearman, rpearson, atol=2e-4, rtol=2e-4), (lt, tb)
        assert jnp.allclose(pmean, rpm, atol=2e-4, rtol=2e-4), (lt, tb)
        assert jnp.allclose(tmean, rtm, atol=2e-4, rtol=2e-4), (lt, tb)
        logging_output = record_logging_output(
            logging_output, B,
            {'loss': loss, 'pearson': pearson, 'spearman': spearman,
             'predictions': pmean, 'target': tmean})

    # Odd number of tiles -> single-core path with a partial last block.
    B2 = 300
    scores2 = jax.random.normal(k_scores2, (B2, H), dtype=jnp.float32)
    scores2 = scores2.astype(jnp.bfloat16)
    target2 = jax.random.uniform(k_tgt2, (B2, 1), dtype=jnp.float32) * 5.0
    out = jax.block_until_ready(
        sts_loss_forward(scores2, weight, bias, target2,
                         loss_type='mse', block_b=128))
    pred, loss, pearson, spearman, pmean, tmean = out
    rpred, rloss, rpearson, rpm, rtm = reference(scores2, weight, bias,
                                                 target2, 'mse')
    assert jnp.allclose(pred, rpred, atol=2e-4, rtol=2e-4)
    assert jnp.allclose(loss, rloss, atol=2e-4, rtol=2e-4)
    assert jnp.allclose(pearson, rpearson, atol=2e-4, rtol=2e-4)
    assert jnp.allclose(pmean, rpm, atol=2e-4, rtol=2e-4)
    assert jnp.allclose(tmean, rtm, atol=2e-4, rtol=2e-4)

    print("KERNEL_OK")
</pallas_src>

<mosaic_0001>
module attributes {stable_mosaic.version = 11 : i64} {
  func.func @sts_loss_kernel(%arg0: i32, %arg1: i32, %arg2: memref<128x64xbf16, #tpu.memory_space<vmem>>, %arg3: memref<8x64xbf16, #tpu.memory_space<vmem>>, %arg4: memref<1xf32, #tpu.memory_space<smem>>, %arg5: memref<1x128xf32, #tpu.memory_space<vmem>>, %arg6: memref<1x128xf32, #tpu.memory_space<vmem>>, %arg7: memref<8x128xf32, #tpu.memory_space<vmem>>) attributes {dimension_semantics = [#tpu.dimension_semantics<parallel>, #tpu.dimension_semantics<arbitrary>], iteration_bounds = array<i64: 2, 1>, scalar_prefetch = 0 : i64, scratch_operands = 0 : i64, tpu.core_type = #tpu.core_type<tc>, window_params = [{transform_indices = @transform_0, window_bounds = array<i64: 128, 64>}, {pipeline_mode = #tpu.pipeline_mode<synchronous>, transform_indices = @transform_1, window_bounds = array<i64: 8, 64>}, {transform_indices = @transform_2, window_bounds = array<i64: 1>}, {transform_indices = @transform_3, window_bounds = array<i64: 1, 128>}, {transform_indices = @transform_4, window_bounds = array<i64: 1, 128>}, {transform_indices = @transform_5, window_bounds = array<i64: 8, 128>}]} {
    %c1_i32 = arith.constant 1 : i32
    %0 = arith.muli %arg0, %c1_i32 : i32
    %1 = arith.addi %0, %arg1 : i32
    %c0_i32 = arith.constant 0 : i32
    %2 = arith.cmpi eq, %arg1, %c0_i32 : i32
    %3 = arith.extui %2 : i1 to i32
    %c0_i32_0 = arith.constant 0 : i32
    %4 = arith.cmpi ne, %3, %c0_i32_0 : i32
    scf.if %4 {
      %cst_17 = arith.constant 0.000000e+00 : f32
      %38 = vector.broadcast %cst_17 : f32 to vector<8x128xf32>
      %c0_18 = arith.constant 0 : index
      %c0_19 = arith.constant 0 : index
      %39 = vector.load %arg7[%c0_18, %c0_19] : memref<8x128xf32, #tpu.memory_space<vmem>>, vector<8x128xf32>
      tpu.vector_store %arg7[%c0_18, %c0_19], %38 {strides = array<i32>} : memref<8x128xf32, #tpu.memory_space<vmem>>, vector<8x128xf32>,
    } else {
    }
    %c0 = arith.constant 0 : index
    %c0_1 = arith.constant 0 : index
    %5 = vector.load %arg3[%c0, %c0_1] : memref<8x64xbf16, #tpu.memory_space<vmem>>, vector<8x64xbf16>
    %c0_2 = arith.constant 0 : index
    %c0_3 = arith.constant 0 : index
    %6 = vector.load %arg2[%c0_2, %c0_3] : memref<128x64xbf16, #tpu.memory_space<vmem>>, vector<128x64xbf16>
    %cst = arith.constant dense<0.000000e+00> : vector<8x128xf32>
    %7 = tpu.matmul %5, %6, %cst {dimension_numbers = #tpu.dot_dimension_numbers<[1], [1], [0], [0], [0, 0, 1, 0], [], []>} : vector<8x64xbf16>, vector<128x64xbf16>, vector<8x128xf32> -> vector<8x128xf32>
    %8 = vector.extract_strided_slice %7 {offsets = [0, 0], sizes = [1, 128], strides = [1, 1]} : vector<8x128xf32> to vector<1x128xf32>
    %c0_4 = arith.constant 0 : index
    %9 = memref.load %arg4[%c0_4] : memref<1xf32, #tpu.memory_space<smem>>
    %10 = vector.broadcast %9 : f32 to vector<1x128xf32>
    %11 = arith.addf %8, %10 : vector<1x128xf32>
    %c0_5 = arith.constant 0 : index
    %c0_6 = arith.constant 0 : index
    %12 = vector.load %arg5[%c0_5, %c0_6] : memref<1x128xf32, #tpu.memory_space<vmem>>, vector<1x128xf32>
    %c128_i32 = arith.constant 128 : i32
    %13 = arith.muli %1, %c128_i32 : i32
    %14 = tpu.iota {dimensions = array<i32: 1>} : vector<1x128xi32>
    %15 = vector.broadcast %13 : i32 to vector<1x128xi32>
    %16 = arith.addi %15, %14 : vector<1x128xi32>
    %c200_i32 = arith.constant 200 : i32
    %17 = vector.broadcast %c200_i32 : i32 to vector<1x128xi32>
    %18 = arith.cmpi slt, %16, %17 : vector<1x128xi32>
    %cst_7 = arith.constant 0.000000e+00 : f32
    %19 = vector.broadcast %cst_7 : f32 to vector<1x128xf32>
    %20 = arith.select %18, %11, %19 : vector<1x128xi1>, vector<1x128xf32>
    %cst_8 = arith.constant 0.000000e+00 : f32
    %21 = vector.broadcast %cst_8 : f32 to vector<1x128xf32>
    %22 = arith.select %18, %12, %21 : vector<1x128xi1>, vector<1x128xf32>
    %c0_9 = arith.constant 0 : index
    %c0_10 = arith.constant 0 : index
    %23 = vector.load %arg6[%c0_9, %c0_10] : memref<1x128xf32, #tpu.memory_space<vmem>>, vector<1x128xf32>
    tpu.vector_store %arg6[%c0_9, %c0_10], %20 {strides = array<i32>} : memref<1x128xf32, #tpu.memory_space<vmem>>, vector<1x128xf32>,
    %24 = arith.subf %20, %22 : vector<1x128xf32>
    %25 = arith.mulf %24, %24 : vector<1x128xf32>
    %26 = tpu.concatenate %20, %22 in 0 : vector<1x128xf32>, vector<1x128xf32> -> vector<2x128xf32>
    %27 = arith.mulf %26, %26 : vector<2x128xf32>
    %28 = arith.mulf %20, %22 : vector<1x128xf32>
    %29 = tpu.concatenate %25, %26, %27, %28 in 0 : vector<1x128xf32>, vector<2x128xf32>, vector<2x128xf32>, vector<1x128xf32> -> vector<6x128xf32>
    %cst_11 = arith.constant dense<0.000000e+00> : vector<6xf32>
    %30 = vector.multi_reduction <add>, %29, %cst_11 [1] : vector<6x128xf32> to vector<6xf32>
    %31 = vector.shape_cast %30 : vector<6xf32> to vector<6x1xf32>
    %cst_12 = arith.constant 0.000000e+00 : f32
    %32 = vector.broadcast %cst_12 : f32 to vector<2x1xf32>
    %33 = tpu.concatenate %31, %32 in 0 : vector<6x1xf32>, vector<2x1xf32> -> vector<8x1xf32>
    %c0_13 = arith.constant 0 : index
    %c0_14 = arith.constant 0 : index
    %34 = vector.load %arg7[%c0_13, %c0_14] : memref<8x128xf32, #tpu.memory_space<vmem>>, vector<8x128xf32>
    %35 = vector.broadcast %33 : vector<8x1xf32> to vector<8x128xf32>
    %36 = arith.addf %34, %35 : vector<8x128xf32>
    %c0_15 = arith.constant 0 : index
    %c0_16 = arith.constant 0 : index
    %37 = vector.load %arg7[%c0_15, %c0_16] : memref<8x128xf32, #tpu.memory_space<vmem>>, vector<8x128xf32>
    tpu.vector_store %arg7[%c0_15, %c0_16], %36 {strides = array<i32>} : memref<8x128xf32, #tpu.memory_space<vmem>>, vector<8x128xf32>,
    return
  }
  func.func @transform_0(%arg0: i32, %arg1: i32) -> (i32, i32) {
    %c1_i32 = arith.constant 1 : i32
    %0 = arith.muli %arg0, %c1_i32 : i32
    %1 = arith.addi %0, %arg1 : i32
    %c0_i32 = arith.constant 0 : i32
    %c0_i32_0 = arith.constant 0 : i32
    return %1, %c0_i32 : i32, i32
  }
  func.func @transform_1(%arg0: i32, %arg1: i32) -> (i32, i32) {
    %c0_i32 = arith.constant 0 : i32
    %c0_i32_0 = arith.constant 0 : i32
    %c0_i32_1 = arith.constant 0 : i32
    return %c0_i32, %c0_i32_0 : i32, i32
  }
  func.func @transform_2(%arg0: i32, %arg1: i32) -> i32 {
    %c0_i32 = arith.constant 0 : i32
    %c0_i32_0 = arith.constant 0 : i32
    return %c0_i32 : i32
  }
  func.func @transform_3(%arg0: i32, %arg1: i32) -> (i32, i32) {
    %c1_i32 = arith.constant 1 : i32
    %0 = arith.muli %arg0, %c1_i32 : i32
    %1 = arith.addi %0, %arg1 : i32
    %c0_i32 = arith.constant 0 : i32
    %c0_i32_0 = arith.constant 0 : i32
    return %c0_i32, %1 : i32, i32
  }
  func.func @transform_4(%arg0: i32, %arg1: i32) -> (i32, i32) {
    %c1_i32 = arith.constant 1 : i32
    %0 = arith.muli %arg0, %c1_i32 : i32
    %1 = arith.addi %0, %arg1 : i32
    %c0_i32 = arith.constant 0 : i32
    %c0_i32_0 = arith.constant 0 : i32
    return %c0_i32, %1 : i32, i32
  }
  func.func @transform_5(%arg0: i32, %arg1: i32) -> (i32, i32) {
    %c0_i32 = arith.constant 0 : i32
    %c0_i32_0 = arith.constant 0 : i32
    return %c0_i32, %arg0 : i32, i32
  }
}

</mosaic_0001>

<bundles_post_ra>
// kernel: tpu_custom_call.1
= control target key start
LH: loop header
LB: loop body
LE: loop exit
PB: predicated region body
PF: predicated region fallthrough
CT: control target
= control target key end

     0   :  { %s1058_s0 = inlined_call_operand.vmem [shape: bf16[200,64], index: 0, kind: input, shape index: {}]   ;;  %s1059_s1 = inlined_call_operand.vmem [shape: bf16[8,64], index: 1, kind: input, shape index: {}]   ;;  %s1060_s2 = inlined_call_operand.<no memory space> [shape: f32[1], index: 2, kind: input, shape index: {}]   ;;  %s1061_s3 = inlined_call_operand.vmem [shape: f32[1,200], index: 3, kind: input, shape index: {}]   ;;  %s1062_s4 = inlined_call_operand.hbm [shape: f32[1,200], index: 4, kind: output, shape index: {0}]   ;;  %s1063_s5 = inlined_call_operand.hbm [shape: f32[8,256], index: 5, kind: output, shape index: {1}]  }
   0x1   :  { %11 = sst [smem:[#allocation2]] %s1060_s2 }
   0x2   :  { %12 = vsyncpa [#allocation4], 0 }
   0x3   :  { %14 = vsyncpa [#allocation4 + $0x1], 0 }
   0x4   :  { %15 = vsyncpa [#allocation6], 0 }
   0x5   :  { %17 = vsyncpa [#allocation6 + $0x1], 0  ;;  %s891_s20 = smov 0   ;;  %s893_s21 = smov 0  }
   0x6   :  { %s895_s22 = smov 0   ;;  %s897_s23 = smov 0  }
   0x7   :  { %s899_s24 = smov 0   ;;  %s901_s25 = smov 0  }
   0x8 LB: > { %s617_s2 = sadd.s32 4294967295, %s851_s25   ;;  %s618_s26 = sadd.s32 4294967294, %s851_s25   ;;  %s851_s25 = sphi %s901_s25, %s23_s25   ;;  %s847_s24 = sphi %s899_s24, %s1070_s24   ;;  %s843_s23 = sphi %s897_s23, %s1069_s23   ;;  %s839_s22 = sphi %s895_s22, %s1068_s22   ;;  %s835_s21 = sphi %s893_s21, %s1067_s21   ;;  %s831_s20 = sphi %s891_s20, %s1066_s20  }
   0x9   : > { %s35_s27 = sadd.s32 1, %s847_s24  ;;  %s142_s28 = sadd.s32 1, %s839_s22 }
   0xa   : > { %p37_p0 = scmp.ge.s32.totalorder %s35_s27, 2  ;;  %p152_p1 = scmp.ne.s32.totalorder %s839_s22, %s835_s21 }
   0xb   : > { %p153_p2 = scmp.eq.s32.totalorder %s617_s2, 1  ;;  %p158_p3 = scmp.ne.s32.totalorder %s835_s21, %s831_s20 }
   0xc   : > { %s1072_s27 = smov (%p37_p0, %s35_s27), 0  ;;  %p159_p5 = scmp.eq.s32.totalorder %s618_s26, 1 }
   0xd   : > { %p931_p4 = por %p153_p2, %p152_p1  ;;  %s139_s30 = ssub.s32 %s847_s24, %s1072_s27 }
   0xe   : > { %p621_p6 = scmp.ge.s32.totalorder %s851_s25, 1  ;;  %p140_p7 = scmp.eq.s32.totalorder %s139_s30, 0 }
   0xf   : > { %p938_p8 = por %p159_p5, %p158_p3  ;;  %p236_p9 = scmp.lt.s32.totalorder %s851_s25, 3 }
  0x10   : > { %s944_s7 = scalar_select %p140_p7, %s839_s22, %s142_s28  }
  0x11   : > { %p237_p10 = pnand %p621_p6, %p236_p9 }
  0x12   : > { %s947_s8 = sshll.u32 (!%p237_p10), %s843_s23, 4  ;;  %v853_v0 = vmov (!%p237_p10), 0.0   ;;  %vm854_vm0 = vmmov (!%p237_p10), 0   ;;  %vm363_vm1 = vcmask (!%p237_p10), 523264   ;;  %v306_v17 = vld [vmem:[%s1059_s1] sm:$0xf] (!%p237_p10)  ;;  %v436_v18 = vlaneseq (!%p237_p10) }
  0x13   : > { %240 = sbr.rel (%p237_p10) target bundleno = 603 (0x25b), region = 36  ;;  %649 = vmatprep.subr.bf16.mxu0 (!%p237_p10), %v853_v0  ;;  %p283_p11 = scmp.lt.s32.totalorder (!%p237_p10), %s947_s8, 24  ;;  %665 = vmatprep.mubr.msk.bf16.mxu0 (!%p237_p10), %vm854_vm0, %v853_v0  ;;  %vm449_vm3 = vcmask (!%p237_p10), 1040384   ;;  %vm463_vm4 = vcmask (!%p237_p10), 1042432   ;;  %vm465_vm5 = vcmask (!%p237_p10), 1044480   ;;  %vm467_vm6 = vcmask (!%p237_p10), 1045504  }
  0x14   : > { %p294_p12 = scmp.lt.s32.totalorder (!%p237_p10), %s843_s23, 1  ;;  %s634_s16 = sshll.u32 (!%p237_p10), %s843_s23, 7  ;;  %v437_v19 = vand.u32 (!%p237_p10), 127, %v436_v18  ;;  %v855_v44 = vmov (!%p237_p10), 0  }
  0x15   : > { %v438_v20 = vstv (!%p237_p10), %s634_s16  ;;  %s431_s18 = sld [smem:[#allocation2]] (!%p237_p10)  ;;  %s975_s28 = sand.u32 (!%p237_p10), 1, %s835_s21   ;;  %732 = vset.pattern.permute.xlu0 (!%p237_p10), %v855_v44 }
  0x16   : > { %v439_v21 = vadd.s32 (!%p237_p10), %v438_v20, %v437_v19  ;;  %s269_s30 = scalar_lea.vmem (!%p237_p10), [#allocation3], %s975_s28  ;;  %s984_s12 = scalar_lea.hbm (!%p237_p10), %s1062_s4, %s947_s8 }
  0x17   : > { %s856_s15 = smov (!%p237_p10), [#allocation3]  }
  0x18   : > { %vm440_vm2 = vcmp.lt.s32.totalorder (!%p237_p10), %v439_v21, 200 }
  0x1a   : > { %s284_s9 = scalar_select %p283_p11, %s947_s8, 24 }
  0x1b   : > { %s295_s17 = scalar_select %p294_p12, %s843_s23, 1  ;;  %v432_v24 = vstv %s431_s18 }
  0x1c   : > { %s624_s10 = sshll.u32 %s284_s9, 2  ;;  %s499_s9 = sshll.u32 %s269_s30, 4  ;;  %s500_s9 = int_to_ptr.vmem [resolvable:$true] %s499_s9 }
  0x1d   : > { %s286_s13 = scalar_lea.vmem %s1058_s0, %s624_s10  ;;  %s296_s26 = scalar_lea.vmem %s1061_s3, %s295_s17 }
  0x1e   : > { %v733_v1 = vld [vmem:[%s286_s13] sm:$0xff]   ;;  %v734_v3 = vld [vmem:[%s286_s13 + $0x8] sm:$0xff]   ;;  %v735_v5 = vld [vmem:[%s286_s13 + $0x10] sm:$0xff]   ;;  %s741_s14 = scalar_lea.vmem %s500_s9, 16  ;;  %s745_s17 = sshll.u32 %s856_s15, 4  ;;  %s746_s17 = int_to_ptr.vmem [resolvable:$false] %s745_s17 }
  0x1f   : > { %v368_v2 = vsel %vm363_vm1, %v733_v1, 0  ;;  %v371_v4 = vsel %vm363_vm1, %v734_v3, 0  ;;  %v374_v6 = vsel %vm363_vm1, %v735_v5, 0  ;;  %v736_v7 = vld [vmem:[%s286_s13 + $0x18] sm:$0xff]   ;;  %v737_v9 = vld [vmem:[%s286_s13 + $0x20] sm:$0xff]   ;;  %v738_v11 = vld [vmem:[%s286_s13 + $0x28] sm:$0xff]   ;;  %p742_p13 = scmp.ne.s32.totalorder %s500_s9, %s741_s14  ;;  %p748_p2 = scmp.lt.s32.totalorder %s500_s9, %s746_s17 }
  0x20   : > { %650 = vmatpush3.bf16.xpose.msra.mxu0 %v368_v2  ;;  %v377_v8 = vsel %vm363_vm1, %v736_v7, 0  ;;  %v380_v10 = vsel %vm363_vm1, %v737_v9, 0  ;;  %v383_v12 = vsel %vm363_vm1, %v738_v11, 0  ;;  %v739_v13 = vld [vmem:[%s286_s13 + $0x30] sm:$0xff]   ;;  %v740_v15 = vld [vmem:[%s286_s13 + $0x38] sm:$0xff]   ;;  %s481_s13 = scalar_lea.sflag [#allocation4], %s975_s28 }
  0x21   : > { %651 = vmatprep.subr.bf16.mxu0 %v853_v0  ;;  %v386_v14 = vsel %vm363_vm1, %v739_v13, 0  ;;  %v389_v16 = vsel %vm363_vm1, %v740_v15, 0  ;;  %v434_v22 = vld [vmem:[%s296_s26] sm:$0x1]  ;;  %p743_p0 = pnand %p742_p13, %p931_p4  ;;  %s747_s18 = scalar_lea.vmem %s746_s17, 32 }
  0x22   : > { %v442_v23 = vsel %vm440_vm2, %v434_v22, 0.0  ;;  %p749_p3 = scmp.lt.s32.totalorder %s747_s18, %s741_s14 }
  0x23   : > { %v447_v26 = vrot.slane %v442_v23, 7  ;;  %p744_p1 = pneg %p743_p0 }
  0x24   : > { %p750_p5 = por %p749_p3, %p748_p2 }
  0x26   : > { %p751_p6 = pnand %p750_p5, %p744_p1 }
  0x28   : > { %652 = vmatpush3.bf16.xpose.msra.mxu0 %v371_v4 }
  0x29   : > { %653 = vmatprep.subr.bf16.mxu0 %v853_v0 }
  0x30   : > { %654 = vmatpush3.bf16.xpose.msra.mxu0 %v374_v6 }
  0x31   : > { %655 = vmatprep.subr.bf16.mxu0 %v853_v0 }
  0x38   : > { %656 = vmatpush3.bf16.xpose.msra.mxu0 %v377_v8 }
  0x39   : > { %657 = vmatprep.subr.bf16.mxu0 %v853_v0 }
  0x40   : > { %658 = vmatpush3.bf16.xpose.msra.mxu0 %v380_v10 }
  0x41   : > { %659 = vmatprep.subr.bf16.mxu0 %v853_v0 }
  0x48   : > { %660 = vmatpush3.bf16.xpose.msra.mxu0 %v383_v12 }
  0x49   : > { %661 = vmatprep.subr.bf16.mxu0 %v853_v0 }
  0x50   : > { %662 = vmatpush3.bf16.xpose.msra.mxu0 %v386_v14 }
  0x51   : > { %663 = vmatprep.subr.bf16.mxu0 %v853_v0 }
  0x58   : > { %664 = vmatpush3.bf16.xpose.msra.mxu0 %v389_v16 }
  0x5f   : > { %666 = vmatmul.mubr.msk.bf16.vlgmr.msra.gmra.mrb[0].mxu0 %vm363_vm1, %v306_v17 }
 0x132   : > { %v425_v25 = vpop.f32.mrb[0].mxu0 }
 0x133   : > { %v433_v27 = vadd.f32 %v432_v24, %v425_v25  ;;  %v667_v28 = vpop.f32.mrb[1].mxu0 }
 0x134   : > { %v428_v29 = vpop.f32.mrb[2].mxu0 }
 0x135   : > { %v441_v30 = vsel %vm440_vm2, %v433_v27, 0.0  ;;  %v668_v31 = vpop.f32.mrb[3].mxu0 }
 0x136   : > { %v444_v32 = vsub.f32 %v441_v30, %v442_v23  ;;  %v450_v33 = vsel %vm449_vm3, %v441_v30, %v447_v26  ;;  %v452_v34 = vmul.f32 %v442_v23, %v441_v30  ;;  %443 = vst [vmem:[%s269_s30] sm:$0x1] %v441_v30 }
 0x137   : > { %v451_v35 = vmul.f32 %v450_v33, %v450_v33  ;;  %v454_v36 = vrot.slane %v450_v33, 7 }
 0x138   : > { %v445_v37 = vmul.f32 %v444_v32, %v444_v32  ;;  %v460_v39 = vrot.slane %v452_v34, 3 }
 0x139   : > { %v457_v38 = vrot.slane %v451_v35, 5 }
 0x13a   : > { %v462_v40 = vsel %vm449_vm3, %v445_v37, %v454_v36 }
 0x13b   : > { %v464_v41 = vsel %vm463_vm4, %v462_v40, %v457_v38 }
 0x13c   : > { %v466_v42 = vsel %vm465_vm5, %v464_v41, %v460_v39 }
 0x13d   : > { %v468_v43 = vsel %vm467_vm6, %v466_v42, 0.0 }
 0x13e   : > { %469 = vadd.xlane.f32.xlu0 %v468_v43 }
 0x1cb   : > { %v470_v45 = vpop.xlane.xlu0 %469 }
 0x1cc   : > { %v471_v46 = vsel %vm467_vm6, %v470_v45, 0.0 }
 0x1cd   : > { %475 = vperm.xlu0 %732, %v471_v46  }
 0x1ce   : > { %754 = shalt.err (!%p751_p6)
}
 0x1cf   : > { %s755_s8 = scalar_lea.hbm %s984_s12, 16  ;;  %s759_s26 = scalar_lea.hbm %s1062_s4, 32 }
 0x1d0   : > { %p756_p7 = scmp.ne.s32.totalorder %s984_s12, %s755_s8  ;;  %p760_p11 = scmp.lt.u32.totalorder %s984_s12, %s1062_s4 }
 0x1d1   : > { %p761_p12 = scmp.lt.u32.totalorder %s759_s26, %s755_s8  ;;  %p763_p0 = scmp.lt.u32.totalorder %s755_s8, %s984_s12 }
 0x1d2   : > { %p757_p9 = pnand %p756_p7, %p931_p4 }
 0x1d3   : > { %p762_p13 = por %p761_p12, %p760_p11 }
 0x1d4   : > { %p758_p10 = pneg %p757_p9 }
 0x1d5   : > { %p764_p1 = por %p763_p0, %p762_p13 }
 0x1d7   : > { %p765_p2 = pnand %p764_p1, %p758_p10 }
 0x1d9   : > { %768 = shalt.err (!%p765_p2)
}
 0x1da   : > { %669 = dma.vmem_to_hbm [thread:$0]  (%p931_p4), %s500_s9, 16, %s984_s12, %s481_s13  }
 0x1db   : > { %s622_s11 = sshll.u32 %s975_s28, 3  ;;  %s1010_s8 = scalar_lea.hbm %s1063_s5, %s634_s16 }
 0x1dc   : > { %s276_s14 = scalar_lea.vmem [#allocation5], %s622_s11  ;;  %s485_s19 = scalar_lea.sflag [#allocation6], %s975_s28 }
 0x1dd   : > { %s512_s15 = sshll.u32 %s276_s14, 4  ;;  %s857_s9 = smov [#allocation5]   ;;  %s1012_s15 = int_to_ptr.vmem [resolvable:$true] %s512_s15 }
 0x1de   : > { %s769_s2 = scalar_lea.vmem %s1012_s15, 128  ;;  %s773_s12 = sshll.u32 %s857_s9, 4  ;;  %s774_s12 = int_to_ptr.vmem [resolvable:$false] %s773_s12 }
 0x1df   : > { %p770_p3 = scmp.ne.s32.totalorder %s1012_s15, %s769_s2  ;;  %s775_s23 = scalar_lea.vmem %s774_s12, 256 }
 0x1e0   : > { %p776_p7 = scmp.lt.s32.totalorder %s1012_s15, %s774_s12  ;;  %p777_p9 = scmp.lt.s32.totalorder %s775_s23, %s769_s2 }
 0x1e1   : > { %p771_p5 = pnand %p770_p3, %p931_p4 }
 0x1e2   : > { %p778_p10 = por %p777_p9, %p776_p7 }
 0x1e3   : > { %p772_p6 = pneg %p771_p5 }
 0x1e5   : > { %p779_p11 = pnand %p778_p10, %p772_p6 }
 0x24c   : > { %v476_v47 = vpop.permute.xlu0 %475 }
 0x24d   : > { %479 = vst [vmem:[%s276_s14] sm:$0xff] %v476_v47 }
 0x24e   : > { %782 = shalt.err (!%p779_p11)
}
 0x24f   : > { %s783_s16 = scalar_lea.hbm %s1010_s8, 128  ;;  %s787_s26 = scalar_lea.hbm %s1063_s5, 256 }
 0x250   : > { %p784_p12 = scmp.ne.s32.totalorder %s1010_s8, %s783_s16  ;;  %p788_p1 = scmp.lt.u32.totalorder %s1010_s8, %s1063_s5 }
 0x251   : > { %p789_p2 = scmp.lt.u32.totalorder %s787_s26, %s783_s16  ;;  %p791_p5 = scmp.lt.u32.totalorder %s783_s16, %s1010_s8 }
 0x252   : > { %p785_p13 = pnand %p784_p12, %p931_p4 }
 0x253   : > { %p790_p3 = por %p789_p2, %p788_p1 }
 0x254   : > { %p786_p0 = pneg %p785_p13 }
 0x255   : > { %p792_p6 = por %p791_p5, %p790_p3 }
 0x257   : > { %p793_p7 = pnand %p792_p6, %p786_p0 }
 0x259   : > { %796 = shalt.err (!%p793_p7)
}
 0x25a   : > { %670 = dma.vmem_to_hbm [thread:$0]  (%p931_p4), %s1012_s15, 128, %s1010_s8, %s485_s19  }
 0x25b PF: > { %p680_p9 = scmp.ge.s32.totalorder %s851_s25, 2  ;;  %s524_s11 = sand.u32 1, %s831_s20  }
 0x25c   : > { %s525_s14 = scalar_lea.sflag [#allocation4], %s524_s11 }
 0x25d   : > { %p674_p10 = pnand %p680_p9, %p938_p8 }
 0x25f   : > { %822 = dma.done.wait (!%p674_p10), %s525_s14, 16  }
 0x260   : > { %824 = vsyncadd (!%p674_p10), %s525_s14, 4294967280  ;;  %s533_s17 = scalar_lea.sflag [#allocation6], %s524_s11 }
 0x261   : > { %826 = dma.done.wait (!%p674_p10), %s533_s17, 128  }
 0x262   : > { %828 = vsyncadd (!%p674_p10), %s533_s17, 4294967168  ;;  %s23_s25 = sadd.s32 1, %s851_s25   ;;  %s1066_s20 = smov %s835_s21 }
 0x263   : > { %p20_p11 = scmp.ge.s32.totalorder %s23_s25, 4   ;;  %s1067_s21 = smov %s839_s22 }
 0x264   : > { %s1068_s22 = smov %s944_s7  ;;  %s1069_s23 = smov %s847_s24 }
 0x265   : > { %s1070_s24 = smov %s1072_s27  ;;  %22 = sbr.rel (!%p20_p11) target bundleno = 8 (0x8), region = 95 }
 0x26c   :  { %538 = vsyncpa [#allocation4], 1 }
 0x26d   :  { %540 = vsyncpa [#allocation4 + $0x1], 1 }
 0x26e   :  { %541 = vsyncpa [#allocation6], 1 }
 0x26f   :  { %543 = vsyncpa [#allocation6 + $0x1], 1 }

</bundles_post_ra>
